<compile_context>
chip_gen: v5e
topology: v5e:2x2
jax: 0.10.0
libtpu: 0.0.40
codegen_flags: <defaults>
</compile_context>

<pallas_src>
import functools

import jax
import jax.numpy as jnp
import numpy as np
from jax.experimental import pallas as pl
from jax.experimental.pallas import tpu as pltpu

DIM = 5
NUM_FLOWS = 3
_LANES = 128
_MAX_TILE = 2048  # lanes per grid step; skinny (5-row) tiles -> far below any VMEM limit
_LOG_2PI = float(np.log(2.0 * np.pi))


def _nf_kernel(z_ref, w_ref, u_ref, b_ref, zk_ref, lq_ref, sld_ref, *, batch, tile):
    """One batch tile of the full forward pass.

    z_ref  : (DIM, TILE) VMEM   transposed, zero-padded batch tile
    w_ref  : (NUM_FLOWS, DIM) SMEM
    u_ref  : (NUM_FLOWS, DIM) SMEM
    b_ref  : (NUM_FLOWS,)     SMEM
    zk_ref : (DIM, TILE) VMEM   z_K tile (lane-dense)
    lq_ref : (1, TILE)   VMEM   log_qz0 tile (lane-dense)
    sld_ref: (1, 1)      VMEM   per-tile partial of the batch-summed log-det
    """
    # Load the DIM rows of this tile; each row is a lane-dense (1, TILE) vector.
    z_rows = [z_ref[d:d + 1, :] for d in range(DIM)]

    # log_qz0 (standard MVN base) from z0, DIM unrolled on the VPU.
    sq = z_rows[0] * z_rows[0]
    for d in range(1, DIM):
        sq = sq + z_rows[d] * z_rows[d]
    lq_ref[...] = (-0.5 * DIM * _LOG_2PI) - 0.5 * sq

    ld_total = jnp.zeros_like(sq)  # per-lane accumulated log-det over the 3 flows

    for i in range(NUM_FLOWS):  # tiny static unroll
        # linear = z @ w.T + b : unrolled scalar-broadcast mul/adds (VPU only).
        linear = z_rows[0] * w_ref[i, 0]
        for d in range(1, DIM):
            linear = linear + z_rows[d] * w_ref[i, d]
        linear = linear + b_ref[i]

        act = jnp.tanh(linear)          # (1, TILE), EUP
        one_m_a2 = 1.0 - act * act      # (1 - tanh^2)

        # z <- z + u * act  (per feature row, scalar-broadcast u)
        z_rows = [z_rows[d] + act * u_ref[i, d] for d in range(DIM)]

        # u @ psi.T with psi = (1 - act^2) * w, unrolled over DIM.
        upsi = (one_m_a2 * w_ref[i, 0]) * u_ref[i, 0]
        for d in range(1, DIM):
            upsi = upsi + (one_m_a2 * w_ref[i, d]) * u_ref[i, d]
        ld_total = ld_total + jnp.log(jnp.abs(1.0 + upsi))

    # Lane-dense z_K store, one sublane row per feature dim.
    for d in range(DIM):
        zk_ref[d:d + 1, :] = z_rows[d]

    # Per-tile partial of the batch-summed log-det (mask out padded lanes).
    lane = jax.lax.broadcasted_iota(jnp.int32, ld_total.shape, 1)
    valid = (lane + pl.program_id(0) * tile) < batch
    sld_ref[...] = jnp.sum(jnp.where(valid, ld_total, 0.0), axis=1, keepdims=True)


def normalizing_flow_forward(z, W, U, bias):
    """z: (B, DIM) f32; W,U: (NUM_FLOWS, DIM); bias: (NUM_FLOWS,) or (NUM_FLOWS,1).

    Returns (z_K (B, DIM), log_qzK (1, B), sum_log_det_jacobians (1, 1)),
    matching the PyTorch NormalizingFlowModel.forward shapes/values.
    """
    bsz, dim = z.shape
    assert dim == DIM

    b_lane = ((bsz + _LANES - 1) // _LANES) * _LANES
    tile = min(_MAX_TILE, b_lane)
    num_blocks = (bsz + tile - 1) // tile
    b_pad = num_blocks * tile

    # Layout plumbing: present a lane-major (DIM, B) slab (ideally produced
    # transposed upstream). Pad the batch/lane axis to a tile multiple.
    z_t = jnp.transpose(z)
    if b_pad != bsz:
        z_t = jnp.pad(z_t, ((0, 0), (0, b_pad - bsz)))
    bias_flat = jnp.reshape(bias, (NUM_FLOWS,))

    kernel = functools.partial(_nf_kernel, batch=bsz, tile=tile)

    zk_pad, lq0_pad, sld_parts = pl.pallas_call(
        kernel,
        grid=(num_blocks,),
        in_specs=[
            pl.BlockSpec((DIM, tile), lambda i: (0, i)),                 # z (tiled, pipelined)
            pl.BlockSpec(memory_space=pltpu.MemorySpace.SMEM),           # W  (resident scalars)
            pl.BlockSpec(memory_space=pltpu.MemorySpace.SMEM),           # U
            pl.BlockSpec(memory_space=pltpu.MemorySpace.SMEM),           # bias
        ],
        out_specs=(
            pl.BlockSpec((DIM, tile), lambda i: (0, i)),                 # z_K
            pl.BlockSpec((1, tile), lambda i: (0, i)),                   # log_qz0 (lane-dense)
            pl.BlockSpec((1, 1), lambda i: (i, 0)),                      # per-tile log-det partial
        ),
        out_shape=(
            jax.ShapeDtypeStruct((DIM, b_pad), jnp.float32),
            jax.ShapeDtypeStruct((1, b_pad), jnp.float32),
            jax.ShapeDtypeStruct((num_blocks, 1), jnp.float32),
        ),
        compiler_params=pltpu.CompilerParams(
            dimension_semantics=("parallel",)),
    )(z_t, W, U, bias_flat)

    # Cross-tile reduction of the batch-summed log-det (PyTorch sums over the batch),
    # then the (B,) - (1,1) broadcast for log_qzK — both tiny wrapper-side ops.
    sum_ldj = jnp.sum(sld_parts).reshape(1, 1)
    z_k = jnp.transpose(zk_pad[:, :bsz])           # back to (B, DIM)
    log_qzK = lq0_pad[:, :bsz] - sum_ldj           # (1, B), matches torch broadcast
    return z_k, log_qzK, sum_ldj


def _reference_forward(z, W, U, bias):
    """Pure-JAX reference mirroring the PyTorch module exactly."""
    bias = jnp.reshape(bias, (NUM_FLOWS,))
    z0 = z
    zc = z
    sum_ld = jnp.zeros((1, 1), jnp.float32)
    for i in range(NUM_FLOWS):
        w = W[i:i + 1, :]
        u = U[i:i + 1, :]
        b = bias[i]
        linear = zc @ w.T + b
        act = jnp.tanh(linear)
        psi = (1.0 - act ** 2) * w
        zc = zc + u * act
        ldj = jnp.log(jnp.abs(1.0 + u @ psi.T))            # (1, B)
        sum_ld = sum_ld + jnp.sum(ldj, axis=1, keepdims=True)
    log_qz0 = (-0.5 * DIM * jnp.log(2.0 * jnp.pi)
               - 0.5 * jnp.sum(z0 * z0, axis=1))            # (B,)
    log_qzK = log_qz0 - sum_ld                              # (1, B)
    return zc, log_qzK, sum_ld


if __name__ == "__main__":
    key = jax.random.PRNGKey(0)
    k_z, k_w, k_u, k_b, k_z2 = jax.random.split(key, 5)

    batch = 8
    z = jax.random.normal(k_z, (batch, DIM), dtype=jnp.float32)
    W = jax.random.normal(k_w, (NUM_FLOWS, DIM), dtype=jnp.float32)
    U = jax.random.normal(k_u, (NUM_FLOWS, DIM), dtype=jnp.float32)
    bias = jax.random.normal(k_b, (NUM_FLOWS,), dtype=jnp.float32)

    zk, log_qzK, sum_ldj = normalizing_flow_forward(z, W, U, bias)
    jax.block_until_ready((zk, log_qzK, sum_ldj))

    zk_r, lq_r, sld_r = _reference_forward(z, W, U, bias)
    np.testing.assert_allclose(np.asarray(zk), np.asarray(zk_r), rtol=1e-5, atol=1e-5)
    np.testing.assert_allclose(np.asarray(log_qzK), np.asarray(lq_r), rtol=1e-5, atol=1e-5)
    np.testing.assert_allclose(np.asarray(sum_ldj), np.asarray(sld_r), rtol=1e-5, atol=1e-5)

    # Exercise the multi-tile grid + lane-padding/masking path.
    z_big = jax.random.normal(k_z2, (2600, DIM), dtype=jnp.float32)
    zk2, lq2, sld2 = normalizing_flow_forward(z_big, W, U, bias)
    jax.block_until_ready((zk2, lq2, sld2))
    zk2_r, lq2_r, sld2_r = _reference_forward(z_big, W, U, bias)
    np.testing.assert_allclose(np.asarray(zk2), np.asarray(zk2_r), rtol=1e-5, atol=1e-5)
    np.testing.assert_allclose(np.asarray(lq2), np.asarray(lq2_r), rtol=1e-4, atol=1e-4)
    np.testing.assert_allclose(np.asarray(sld2), np.asarray(sld2_r), rtol=1e-4, atol=1e-4)

    print("KERNEL_OK")
</pallas_src>

<mosaic_0001>
module attributes {stable_mosaic.version = 11 : i64} {
  func.func @_nf_kernel(%arg0: i32, %arg1: memref<5x128xf32, #tpu.memory_space<vmem>>, %arg2: memref<3x5xf32, #tpu.memory_space<smem>>, %arg3: memref<3x5xf32, #tpu.memory_space<smem>>, %arg4: memref<3xf32, #tpu.memory_space<smem>>, %arg5: memref<5x128xf32, #tpu.memory_space<vmem>>, %arg6: memref<1x128xf32, #tpu.memory_space<vmem>>, %arg7: memref<1x1xf32, #tpu.memory_space<vmem>>) attributes {dimension_semantics = [#tpu.dimension_semantics<parallel>], iteration_bounds = array<i64: 1>, scalar_prefetch = 0 : i64, scratch_operands = 0 : i64, tpu.core_type = #tpu.core_type<tc>, window_params = [{transform_indices = @transform_0, window_bounds = array<i64: 5, 128>}, {transform_indices = @transform_1, window_bounds = array<i64: 3, 5>}, {transform_indices = @transform_2, window_bounds = array<i64: 3, 5>}, {transform_indices = @transform_3, window_bounds = array<i64: 3>}, {transform_indices = @transform_4, window_bounds = array<i64: 5, 128>}, {transform_indices = @transform_5, window_bounds = array<i64: 1, 128>}, {transform_indices = @transform_6, window_bounds = array<i64: 1, 1>}]} {
    %c0 = arith.constant 0 : index
    %c0_0 = arith.constant 0 : index
    %0 = vector.load %arg1[%c0, %c0_0] : memref<5x128xf32, #tpu.memory_space<vmem>>, vector<1x128xf32>
    %c1 = arith.constant 1 : index
    %c0_1 = arith.constant 0 : index
    %1 = vector.load %arg1[%c1, %c0_1] : memref<5x128xf32, #tpu.memory_space<vmem>>, vector<1x128xf32>
    %c2 = arith.constant 2 : index
    %c0_2 = arith.constant 0 : index
    %2 = vector.load %arg1[%c2, %c0_2] : memref<5x128xf32, #tpu.memory_space<vmem>>, vector<1x128xf32>
    %c3 = arith.constant 3 : index
    %c0_3 = arith.constant 0 : index
    %3 = vector.load %arg1[%c3, %c0_3] : memref<5x128xf32, #tpu.memory_space<vmem>>, vector<1x128xf32>
    %c4 = arith.constant 4 : index
    %c0_4 = arith.constant 0 : index
    %4 = vector.load %arg1[%c4, %c0_4] : memref<5x128xf32, #tpu.memory_space<vmem>>, vector<1x128xf32>
    %5 = arith.mulf %0, %0 : vector<1x128xf32>
    %6 = arith.mulf %1, %1 : vector<1x128xf32>
    %7 = arith.addf %5, %6 : vector<1x128xf32>
    %8 = arith.mulf %2, %2 : vector<1x128xf32>
    %9 = arith.addf %7, %8 : vector<1x128xf32>
    %10 = arith.mulf %3, %3 : vector<1x128xf32>
    %11 = arith.addf %9, %10 : vector<1x128xf32>
    %12 = arith.mulf %4, %4 : vector<1x128xf32>
    %13 = arith.addf %11, %12 : vector<1x128xf32>
    %cst = arith.constant 5.000000e-01 : f32
    %14 = vector.broadcast %cst : f32 to vector<1x128xf32>
    %15 = arith.mulf %14, %13 : vector<1x128xf32>
    %cst_5 = arith.constant -4.59469271 : f32
    %16 = vector.broadcast %cst_5 : f32 to vector<1x128xf32>
    %17 = arith.subf %16, %15 : vector<1x128xf32>
    %c0_6 = arith.constant 0 : index
    %c0_7 = arith.constant 0 : index
    %18 = vector.load %arg6[%c0_6, %c0_7] : memref<1x128xf32, #tpu.memory_space<vmem>>, vector<1x128xf32>
    tpu.vector_store %arg6[%c0_6, %c0_7], %17 {strides = array<i32>} : memref<1x128xf32, #tpu.memory_space<vmem>>, vector<1x128xf32>,
    %cst_8 = arith.constant 0.000000e+00 : f32
    %19 = vector.broadcast %cst_8 : f32 to vector<1x128xf32>
    %c0_9 = arith.constant 0 : index
    %c0_10 = arith.constant 0 : index
    %20 = memref.load %arg2[%c0_9, %c0_10] : memref<3x5xf32, #tpu.memory_space<smem>>
    %21 = vector.broadcast %20 : f32 to vector<1x128xf32>
    %22 = arith.mulf %0, %21 : vector<1x128xf32>
    %c0_11 = arith.constant 0 : index
    %c1_12 = arith.constant 1 : index
    %23 = memref.load %arg2[%c0_11, %c1_12] : memref<3x5xf32, #tpu.memory_space<smem>>
    %24 = vector.broadcast %23 : f32 to vector<1x128xf32>
    %25 = arith.mulf %1, %24 : vector<1x128xf32>
    %26 = arith.addf %22, %25 : vector<1x128xf32>
    %c0_13 = arith.constant 0 : index
    %c2_14 = arith.constant 2 : index
    %27 = memref.load %arg2[%c0_13, %c2_14] : memref<3x5xf32, #tpu.memory_space<smem>>
    %28 = vector.broadcast %27 : f32 to vector<1x128xf32>
    %29 = arith.mulf %2, %28 : vector<1x128xf32>
    %30 = arith.addf %26, %29 : vector<1x128xf32>
    %c0_15 = arith.constant 0 : index
    %c3_16 = arith.constant 3 : index
    %31 = memref.load %arg2[%c0_15, %c3_16] : memref<3x5xf32, #tpu.memory_space<smem>>
    %32 = vector.broadcast %31 : f32 to vector<1x128xf32>
    %33 = arith.mulf %3, %32 : vector<1x128xf32>
    %34 = arith.addf %30, %33 : vector<1x128xf32>
    %c0_17 = arith.constant 0 : index
    %c4_18 = arith.constant 4 : index
    %35 = memref.load %arg2[%c0_17, %c4_18] : memref<3x5xf32, #tpu.memory_space<smem>>
    %36 = vector.broadcast %35 : f32 to vector<1x128xf32>
    %37 = arith.mulf %4, %36 : vector<1x128xf32>
    %38 = arith.addf %34, %37 : vector<1x128xf32>
    %c0_19 = arith.constant 0 : index
    %39 = memref.load %arg4[%c0_19] : memref<3xf32, #tpu.memory_space<smem>>
    %40 = vector.broadcast %39 : f32 to vector<1x128xf32>
    %41 = arith.addf %38, %40 : vector<1x128xf32>
    %42 = math.tanh %41 : vector<1x128xf32>
    %43 = arith.mulf %42, %42 : vector<1x128xf32>
    %cst_20 = arith.constant 1.000000e+00 : f32
    %44 = vector.broadcast %cst_20 : f32 to vector<1x128xf32>
    %45 = arith.subf %44, %43 : vector<1x128xf32>
    %c0_21 = arith.constant 0 : index
    %c0_22 = arith.constant 0 : index
    %46 = memref.load %arg3[%c0_21, %c0_22] : memref<3x5xf32, #tpu.memory_space<smem>>
    %47 = vector.broadcast %46 : f32 to vector<1x128xf32>
    %48 = arith.mulf %42, %47 : vector<1x128xf32>
    %49 = arith.addf %0, %48 : vector<1x128xf32>
    %c0_23 = arith.constant 0 : index
    %c1_24 = arith.constant 1 : index
    %50 = memref.load %arg3[%c0_23, %c1_24] : memref<3x5xf32, #tpu.memory_space<smem>>
    %51 = vector.broadcast %50 : f32 to vector<1x128xf32>
    %52 = arith.mulf %42, %51 : vector<1x128xf32>
    %53 = arith.addf %1, %52 : vector<1x128xf32>
    %c0_25 = arith.constant 0 : index
    %c2_26 = arith.constant 2 : index
    %54 = memref.load %arg3[%c0_25, %c2_26] : memref<3x5xf32, #tpu.memory_space<smem>>
    %55 = vector.broadcast %54 : f32 to vector<1x128xf32>
    %56 = arith.mulf %42, %55 : vector<1x128xf32>
    %57 = arith.addf %2, %56 : vector<1x128xf32>
    %c0_27 = arith.constant 0 : index
    %c3_28 = arith.constant 3 : index
    %58 = memref.load %arg3[%c0_27, %c3_28] : memref<3x5xf32, #tpu.memory_space<smem>>
    %59 = vector.broadcast %58 : f32 to vector<1x128xf32>
    %60 = arith.mulf %42, %59 : vector<1x128xf32>
    %61 = arith.addf %3, %60 : vector<1x128xf32>
    %c0_29 = arith.constant 0 : index
    %c4_30 = arith.constant 4 : index
    %62 = memref.load %arg3[%c0_29, %c4_30] : memref<3x5xf32, #tpu.memory_space<smem>>
    %63 = vector.broadcast %62 : f32 to vector<1x128xf32>
    %64 = arith.mulf %42, %63 : vector<1x128xf32>
    %65 = arith.addf %4, %64 : vector<1x128xf32>
    %c0_31 = arith.constant 0 : index
    %c0_32 = arith.constant 0 : index
    %66 = memref.load %arg2[%c0_31, %c0_32] : memref<3x5xf32, #tpu.memory_space<smem>>
    %67 = vector.broadcast %66 : f32 to vector<1x128xf32>
    %68 = arith.mulf %45, %67 : vector<1x128xf32>
    %c0_33 = arith.constant 0 : index
    %c0_34 = arith.constant 0 : index
    %69 = memref.load %arg3[%c0_33, %c0_34] : memref<3x5xf32, #tpu.memory_space<smem>>
    %70 = vector.broadcast %69 : f32 to vector<1x128xf32>
    %71 = arith.mulf %68, %70 : vector<1x128xf32>
    %c0_35 = arith.constant 0 : index
    %c1_36 = arith.constant 1 : index
    %72 = memref.load %arg2[%c0_35, %c1_36] : memref<3x5xf32, #tpu.memory_space<smem>>
    %73 = vector.broadcast %72 : f32 to vector<1x128xf32>
    %74 = arith.mulf %45, %73 : vector<1x128xf32>
    %c0_37 = arith.constant 0 : index
    %c1_38 = arith.constant 1 : index
    %75 = memref.load %arg3[%c0_37, %c1_38] : memref<3x5xf32, #tpu.memory_space<smem>>
    %76 = vector.broadcast %75 : f32 to vector<1x128xf32>
    %77 = arith.mulf %74, %76 : vector<1x128xf32>
    %78 = arith.addf %71, %77 : vector<1x128xf32>
    %c0_39 = arith.constant 0 : index
    %c2_40 = arith.constant 2 : index
    %79 = memref.load %arg2[%c0_39, %c2_40] : memref<3x5xf32, #tpu.memory_space<smem>>
    %80 = vector.broadcast %79 : f32 to vector<1x128xf32>
    %81 = arith.mulf %45, %80 : vector<1x128xf32>
    %c0_41 = arith.constant 0 : index
    %c2_42 = arith.constant 2 : index
    %82 = memref.load %arg3[%c0_41, %c2_42] : memref<3x5xf32, #tpu.memory_space<smem>>
    %83 = vector.broadcast %82 : f32 to vector<1x128xf32>
    %84 = arith.mulf %81, %83 : vector<1x128xf32>
    %85 = arith.addf %78, %84 : vector<1x128xf32>
    %c0_43 = arith.constant 0 : index
    %c3_44 = arith.constant 3 : index
    %86 = memref.load %arg2[%c0_43, %c3_44] : memref<3x5xf32, #tpu.memory_space<smem>>
    %87 = vector.broadcast %86 : f32 to vector<1x128xf32>
    %88 = arith.mulf %45, %87 : vector<1x128xf32>
    %c0_45 = arith.constant 0 : index
    %c3_46 = arith.constant 3 : index
    %89 = memref.load %arg3[%c0_45, %c3_46] : memref<3x5xf32, #tpu.memory_space<smem>>
    %90 = vector.broadcast %89 : f32 to vector<1x128xf32>
    %91 = arith.mulf %88, %90 : vector<1x128xf32>
    %92 = arith.addf %85, %91 : vector<1x128xf32>
    %c0_47 = arith.constant 0 : index
    %c4_48 = arith.constant 4 : index
    %93 = memref.load %arg2[%c0_47, %c4_48] : memref<3x5xf32, #tpu.memory_space<smem>>
    %94 = vector.broadcast %93 : f32 to vector<1x128xf32>
    %95 = arith.mulf %45, %94 : vector<1x128xf32>
    %c0_49 = arith.constant 0 : index
    %c4_50 = arith.constant 4 : index
    %96 = memref.load %arg3[%c0_49, %c4_50] : memref<3x5xf32, #tpu.memory_space<smem>>
    %97 = vector.broadcast %96 : f32 to vector<1x128xf32>
    %98 = arith.mulf %95, %97 : vector<1x128xf32>
    %99 = arith.addf %92, %98 : vector<1x128xf32>
    %cst_51 = arith.constant 1.000000e+00 : f32
    %100 = vector.broadcast %cst_51 : f32 to vector<1x128xf32>
    %101 = arith.addf %100, %99 : vector<1x128xf32>
    %102 = math.absf %101 : vector<1x128xf32>
    %103 = math.log %102 : vector<1x128xf32>
    %104 = arith.addf %19, %103 : vector<1x128xf32>
    %c1_52 = arith.constant 1 : index
    %c0_53 = arith.constant 0 : index
    %105 = memref.load %arg2[%c1_52, %c0_53] : memref<3x5xf32, #tpu.memory_space<smem>>
    %106 = vector.broadcast %105 : f32 to vector<1x128xf32>
    %107 = arith.mulf %49, %106 : vector<1x128xf32>
    %c1_54 = arith.constant 1 : index
    %c1_55 = arith.constant 1 : index
    %108 = memref.load %arg2[%c1_54, %c1_55] : memref<3x5xf32, #tpu.memory_space<smem>>
    %109 = vector.broadcast %108 : f32 to vector<1x128xf32>
    %110 = arith.mulf %53, %109 : vector<1x128xf32>
    %111 = arith.addf %107, %110 : vector<1x128xf32>
    %c1_56 = arith.constant 1 : index
    %c2_57 = arith.constant 2 : index
    %112 = memref.load %arg2[%c1_56, %c2_57] : memref<3x5xf32, #tpu.memory_space<smem>>
    %113 = vector.broadcast %112 : f32 to vector<1x128xf32>
    %114 = arith.mulf %57, %113 : vector<1x128xf32>
    %115 = arith.addf %111, %114 : vector<1x128xf32>
    %c1_58 = arith.constant 1 : index
    %c3_59 = arith.constant 3 : index
    %116 = memref.load %arg2[%c1_58, %c3_59] : memref<3x5xf32, #tpu.memory_space<smem>>
    %117 = vector.broadcast %116 : f32 to vector<1x128xf32>
    %118 = arith.mulf %61, %117 : vector<1x128xf32>
    %119 = arith.addf %115, %118 : vector<1x128xf32>
    %c1_60 = arith.constant 1 : index
    %c4_61 = arith.constant 4 : index
    %120 = memref.load %arg2[%c1_60, %c4_61] : memref<3x5xf32, #tpu.memory_space<smem>>
    %121 = vector.broadcast %120 : f32 to vector<1x128xf32>
    %122 = arith.mulf %65, %121 : vector<1x128xf32>
    %123 = arith.addf %119, %122 : vector<1x128xf32>
    %c1_62 = arith.constant 1 : index
    %124 = memref.load %arg4[%c1_62] : memref<3xf32, #tpu.memory_space<smem>>
    %125 = vector.broadcast %124 : f32 to vector<1x128xf32>
    %126 = arith.addf %123, %125 : vector<1x128xf32>
    %127 = math.tanh %126 : vector<1x128xf32>
    %128 = arith.mulf %127, %127 : vector<1x128xf32>
    %cst_63 = arith.constant 1.000000e+00 : f32
    %129 = vector.broadcast %cst_63 : f32 to vector<1x128xf32>
    %130 = arith.subf %129, %128 : vector<1x128xf32>
    %c1_64 = arith.constant 1 : index
    %c0_65 = arith.constant 0 : index
    %131 = memref.load %arg3[%c1_64, %c0_65] : memref<3x5xf32, #tpu.memory_space<smem>>
    %132 = vector.broadcast %131 : f32 to vector<1x128xf32>
    %133 = arith.mulf %127, %132 : vector<1x128xf32>
    %134 = arith.addf %49, %133 : vector<1x128xf32>
    %c1_66 = arith.constant 1 : index
    %c1_67 = arith.constant 1 : index
    %135 = memref.load %arg3[%c1_66, %c1_67] : memref<3x5xf32, #tpu.memory_space<smem>>
    %136 = vector.broadcast %135 : f32 to vector<1x128xf32>
    %137 = arith.mulf %127, %136 : vector<1x128xf32>
    %138 = arith.addf %53, %137 : vector<1x128xf32>
    %c1_68 = arith.constant 1 : index
    %c2_69 = arith.constant 2 : index
    %139 = memref.load %arg3[%c1_68, %c2_69] : memref<3x5xf32, #tpu.memory_space<smem>>
    %140 = vector.broadcast %139 : f32 to vector<1x128xf32>
    %141 = arith.mulf %127, %140 : vector<1x128xf32>
    %142 = arith.addf %57, %141 : vector<1x128xf32>
    %c1_70 = arith.constant 1 : index
    %c3_71 = arith.constant 3 : index
    %143 = memref.load %arg3[%c1_70, %c3_71] : memref<3x5xf32, #tpu.memory_space<smem>>
    %144 = vector.broadcast %143 : f32 to vector<1x128xf32>
    %145 = arith.mulf %127, %144 : vector<1x128xf32>
    %146 = arith.addf %61, %145 : vector<1x128xf32>
    %c1_72 = arith.constant 1 : index
    %c4_73 = arith.constant 4 : index
    %147 = memref.load %arg3[%c1_72, %c4_73] : memref<3x5xf32, #tpu.memory_space<smem>>
    %148 = vector.broadcast %147 : f32 to vector<1x128xf32>
    %149 = arith.mulf %127, %148 : vector<1x128xf32>
    %150 = arith.addf %65, %149 : vector<1x128xf32>
    %c1_74 = arith.constant 1 : index
    %c0_75 = arith.constant 0 : index
    %151 = memref.load %arg2[%c1_74, %c0_75] : memref<3x5xf32, #tpu.memory_space<smem>>
    %152 = vector.broadcast %151 : f32 to vector<1x128xf32>
    %153 = arith.mulf %130, %152 : vector<1x128xf32>
    %c1_76 = arith.constant 1 : index
    %c0_77 = arith.constant 0 : index
    %154 = memref.load %arg3[%c1_76, %c0_77] : memref<3x5xf32, #tpu.memory_space<smem>>
    %155 = vector.broadcast %154 : f32 to vector<1x128xf32>
    %156 = arith.mulf %153, %155 : vector<1x128xf32>
    %c1_78 = arith.constant 1 : index
    %c1_79 = arith.constant 1 : index
    %157 = memref.load %arg2[%c1_78, %c1_79] : memref<3x5xf32, #tpu.memory_space<smem>>
    %158 = vector.broadcast %157 : f32 to vector<1x128xf32>
    %159 = arith.mulf %130, %158 : vector<1x128xf32>
    %c1_80 = arith.constant 1 : index
    %c1_81 = arith.constant 1 : index
    %160 = memref.load %arg3[%c1_80, %c1_81] : memref<3x5xf32, #tpu.memory_space<smem>>
    %161 = vector.broadcast %160 : f32 to vector<1x128xf32>
    %162 = arith.mulf %159, %161 : vector<1x128xf32>
    %163 = arith.addf %156, %162 : vector<1x128xf32>
    %c1_82 = arith.constant 1 : index
    %c2_83 = arith.constant 2 : index
    %164 = memref.load %arg2[%c1_82, %c2_83] : memref<3x5xf32, #tpu.memory_space<smem>>
    %165 = vector.broadcast %164 : f32 to vector<1x128xf32>
    %166 = arith.mulf %130, %165 : vector<1x128xf32>
    %c1_84 = arith.constant 1 : index
    %c2_85 = arith.constant 2 : index
    %167 = memref.load %arg3[%c1_84, %c2_85] : memref<3x5xf32, #tpu.memory_space<smem>>
    %168 = vector.broadcast %167 : f32 to vector<1x128xf32>
    %169 = arith.mulf %166, %168 : vector<1x128xf32>
    %170 = arith.addf %163, %169 : vector<1x128xf32>
    %c1_86 = arith.constant 1 : index
    %c3_87 = arith.constant 3 : index
    %171 = memref.load %arg2[%c1_86, %c3_87] : memref<3x5xf32, #tpu.memory_space<smem>>
    %172 = vector.broadcast %171 : f32 to vector<1x128xf32>
    %173 = arith.mulf %130, %172 : vector<1x128xf32>
    %c1_88 = arith.constant 1 : index
    %c3_89 = arith.constant 3 : index
    %174 = memref.load %arg3[%c1_88, %c3_89] : memref<3x5xf32, #tpu.memory_space<smem>>
    %175 = vector.broadcast %174 : f32 to vector<1x128xf32>
    %176 = arith.mulf %173, %175 : vector<1x128xf32>
    %177 = arith.addf %170, %176 : vector<1x128xf32>
    %c1_90 = arith.constant 1 : index
    %c4_91 = arith.constant 4 : index
    %178 = memref.load %arg2[%c1_90, %c4_91] : memref<3x5xf32, #tpu.memory_space<smem>>
    %179 = vector.broadcast %178 : f32 to vector<1x128xf32>
    %180 = arith.mulf %130, %179 : vector<1x128xf32>
    %c1_92 = arith.constant 1 : index
    %c4_93 = arith.constant 4 : index
    %181 = memref.load %arg3[%c1_92, %c4_93] : memref<3x5xf32, #tpu.memory_space<smem>>
    %182 = vector.broadcast %181 : f32 to vector<1x128xf32>
    %183 = arith.mulf %180, %182 : vector<1x128xf32>
    %184 = arith.addf %177, %183 : vector<1x128xf32>
    %cst_94 = arith.constant 1.000000e+00 : f32
    %185 = vector.broadcast %cst_94 : f32 to vector<1x128xf32>
    %186 = arith.addf %185, %184 : vector<1x128xf32>
    %187 = math.absf %186 : vector<1x128xf32>
    %188 = math.log %187 : vector<1x128xf32>
    %189 = arith.addf %104, %188 : vector<1x128xf32>
    %c2_95 = arith.constant 2 : index
    %c0_96 = arith.constant 0 : index
    %190 = memref.load %arg2[%c2_95, %c0_96] : memref<3x5xf32, #tpu.memory_space<smem>>
    %191 = vector.broadcast %190 : f32 to vector<1x128xf32>
    %192 = arith.mulf %134, %191 : vector<1x128xf32>
    %c2_97 = arith.constant 2 : index
    %c1_98 = arith.constant 1 : index
    %193 = memref.load %arg2[%c2_97, %c1_98] : memref<3x5xf32, #tpu.memory_space<smem>>
    %194 = vector.broadcast %193 : f32 to vector<1x128xf32>
    %195 = arith.mulf %138, %194 : vector<1x128xf32>
    %196 = arith.addf %192, %195 : vector<1x128xf32>
    %c2_99 = arith.constant 2 : index
    %c2_100 = arith.constant 2 : index
    %197 = memref.load %arg2[%c2_99, %c2_100] : memref<3x5xf32, #tpu.memory_space<smem>>
    %198 = vector.broadcast %197 : f32 to vector<1x128xf32>
    %199 = arith.mulf %142, %198 : vector<1x128xf32>
    %200 = arith.addf %196, %199 : vector<1x128xf32>
    %c2_101 = arith.constant 2 : index
    %c3_102 = arith.constant 3 : index
    %201 = memref.load %arg2[%c2_101, %c3_102] : memref<3x5xf32, #tpu.memory_space<smem>>
    %202 = vector.broadcast %201 : f32 to vector<1x128xf32>
    %203 = arith.mulf %146, %202 : vector<1x128xf32>
    %204 = arith.addf %200, %203 : vector<1x128xf32>
    %c2_103 = arith.constant 2 : index
    %c4_104 = arith.constant 4 : index
    %205 = memref.load %arg2[%c2_103, %c4_104] : memref<3x5xf32, #tpu.memory_space<smem>>
    %206 = vector.broadcast %205 : f32 to vector<1x128xf32>
    %207 = arith.mulf %150, %206 : vector<1x128xf32>
    %208 = arith.addf %204, %207 : vector<1x128xf32>
    %c2_105 = arith.constant 2 : index
    %209 = memref.load %arg4[%c2_105] : memref<3xf32, #tpu.memory_space<smem>>
    %210 = vector.broadcast %209 : f32 to vector<1x128xf32>
    %211 = arith.addf %208, %210 : vector<1x128xf32>
    %212 = math.tanh %211 : vector<1x128xf32>
    %213 = arith.mulf %212, %212 : vector<1x128xf32>
    %cst_106 = arith.constant 1.000000e+00 : f32
    %214 = vector.broadcast %cst_106 : f32 to vector<1x128xf32>
    %215 = arith.subf %214, %213 : vector<1x128xf32>
    %c2_107 = arith.constant 2 : index
    %c0_108 = arith.constant 0 : index
    %216 = memref.load %arg3[%c2_107, %c0_108] : memref<3x5xf32, #tpu.memory_space<smem>>
    %217 = vector.broadcast %216 : f32 to vector<1x128xf32>
    %218 = arith.mulf %212, %217 : vector<1x128xf32>
    %219 = arith.addf %134, %218 : vector<1x128xf32>
    %c2_109 = arith.constant 2 : index
    %c1_110 = arith.constant 1 : index
    %220 = memref.load %arg3[%c2_109, %c1_110] : memref<3x5xf32, #tpu.memory_space<smem>>
    %221 = vector.broadcast %220 : f32 to vector<1x128xf32>
    %222 = arith.mulf %212, %221 : vector<1x128xf32>
    %223 = arith.addf %138, %222 : vector<1x128xf32>
    %c2_111 = arith.constant 2 : index
    %c2_112 = arith.constant 2 : index
    %224 = memref.load %arg3[%c2_111, %c2_112] : memref<3x5xf32, #tpu.memory_space<smem>>
    %225 = vector.broadcast %224 : f32 to vector<1x128xf32>
    %226 = arith.mulf %212, %225 : vector<1x128xf32>
    %227 = arith.addf %142, %226 : vector<1x128xf32>
    %c2_113 = arith.constant 2 : index
    %c3_114 = arith.constant 3 : index
    %228 = memref.load %arg3[%c2_113, %c3_114] : memref<3x5xf32, #tpu.memory_space<smem>>
    %229 = vector.broadcast %228 : f32 to vector<1x128xf32>
    %230 = arith.mulf %212, %229 : vector<1x128xf32>
    %231 = arith.addf %146, %230 : vector<1x128xf32>
    %c2_115 = arith.constant 2 : index
    %c4_116 = arith.constant 4 : index
    %232 = memref.load %arg3[%c2_115, %c4_116] : memref<3x5xf32, #tpu.memory_space<smem>>
    %233 = vector.broadcast %232 : f32 to vector<1x128xf32>
    %234 = arith.mulf %212, %233 : vector<1x128xf32>
    %235 = arith.addf %150, %234 : vector<1x128xf32>
    %c2_117 = arith.constant 2 : index
    %c0_118 = arith.constant 0 : index
    %236 = memref.load %arg2[%c2_117, %c0_118] : memref<3x5xf32, #tpu.memory_space<smem>>
    %237 = vector.broadcast %236 : f32 to vector<1x128xf32>
    %238 = arith.mulf %215, %237 : vector<1x128xf32>
    %c2_119 = arith.constant 2 : index
    %c0_120 = arith.constant 0 : index
    %239 = memref.load %arg3[%c2_119, %c0_120] : memref<3x5xf32, #tpu.memory_space<smem>>
    %240 = vector.broadcast %239 : f32 to vector<1x128xf32>
    %241 = arith.mulf %238, %240 : vector<1x128xf32>
    %c2_121 = arith.constant 2 : index
    %c1_122 = arith.constant 1 : index
    %242 = memref.load %arg2[%c2_121, %c1_122] : memref<3x5xf32, #tpu.memory_space<smem>>
    %243 = vector.broadcast %242 : f32 to vector<1x128xf32>
    %244 = arith.mulf %215, %243 : vector<1x128xf32>
    %c2_123 = arith.constant 2 : index
    %c1_124 = arith.constant 1 : index
    %245 = memref.load %arg3[%c2_123, %c1_124] : memref<3x5xf32, #tpu.memory_space<smem>>
    %246 = vector.broadcast %245 : f32 to vector<1x128xf32>
    %247 = arith.mulf %244, %246 : vector<1x128xf32>
    %248 = arith.addf %241, %247 : vector<1x128xf32>
    %c2_125 = arith.constant 2 : index
    %c2_126 = arith.constant 2 : index
    %249 = memref.load %arg2[%c2_125, %c2_126] : memref<3x5xf32, #tpu.memory_space<smem>>
    %250 = vector.broadcast %249 : f32 to vector<1x128xf32>
    %251 = arith.mulf %215, %250 : vector<1x128xf32>
    %c2_127 = arith.constant 2 : index
    %c2_128 = arith.constant 2 : index
    %252 = memref.load %arg3[%c2_127, %c2_128] : memref<3x5xf32, #tpu.memory_space<smem>>
    %253 = vector.broadcast %252 : f32 to vector<1x128xf32>
    %254 = arith.mulf %251, %253 : vector<1x128xf32>
    %255 = arith.addf %248, %254 : vector<1x128xf32>
    %c2_129 = arith.constant 2 : index
    %c3_130 = arith.constant 3 : index
    %256 = memref.load %arg2[%c2_129, %c3_130] : memref<3x5xf32, #tpu.memory_space<smem>>
    %257 = vector.broadcast %256 : f32 to vector<1x128xf32>
    %258 = arith.mulf %215, %257 : vector<1x128xf32>
    %c2_131 = arith.constant 2 : index
    %c3_132 = arith.constant 3 : index
    %259 = memref.load %arg3[%c2_131, %c3_132] : memref<3x5xf32, #tpu.memory_space<smem>>
    %260 = vector.broadcast %259 : f32 to vector<1x128xf32>
    %261 = arith.mulf %258, %260 : vector<1x128xf32>
    %262 = arith.addf %255, %261 : vector<1x128xf32>
    %c2_133 = arith.constant 2 : index
    %c4_134 = arith.constant 4 : index
    %263 = memref.load %arg2[%c2_133, %c4_134] : memref<3x5xf32, #tpu.memory_space<smem>>
    %264 = vector.broadcast %263 : f32 to vector<1x128xf32>
    %265 = arith.mulf %215, %264 : vector<1x128xf32>
    %c2_135 = arith.constant 2 : index
    %c4_136 = arith.constant 4 : index
    %266 = memref.load %arg3[%c2_135, %c4_136] : memref<3x5xf32, #tpu.memory_space<smem>>
    %267 = vector.broadcast %266 : f32 to vector<1x128xf32>
    %268 = arith.mulf %265, %267 : vector<1x128xf32>
    %269 = arith.addf %262, %268 : vector<1x128xf32>
    %cst_137 = arith.constant 1.000000e+00 : f32
    %270 = vector.broadcast %cst_137 : f32 to vector<1x128xf32>
    %271 = arith.addf %270, %269 : vector<1x128xf32>
    %272 = math.absf %271 : vector<1x128xf32>
    %273 = math.log %272 : vector<1x128xf32>
    %274 = arith.addf %189, %273 : vector<1x128xf32>
    %c0_138 = arith.constant 0 : index
    %c0_139 = arith.constant 0 : index
    %275 = vector.load %arg5[%c0_138, %c0_139] : memref<5x128xf32, #tpu.memory_space<vmem>>, vector<1x128xf32>
    tpu.vector_store %arg5[%c0_138, %c0_139], %219 {strides = array<i32>} : memref<5x128xf32, #tpu.memory_space<vmem>>, vector<1x128xf32>,
    %c1_140 = arith.constant 1 : index
    %c0_141 = arith.constant 0 : index
    %276 = vector.load %arg5[%c1_140, %c0_141] : memref<5x128xf32, #tpu.memory_space<vmem>>, vector<1x128xf32>
    tpu.vector_store %arg5[%c1_140, %c0_141], %223 {strides = array<i32>} : memref<5x128xf32, #tpu.memory_space<vmem>>, vector<1x128xf32>,
    %c2_142 = arith.constant 2 : index
    %c0_143 = arith.constant 0 : index
    %277 = vector.load %arg5[%c2_142, %c0_143] : memref<5x128xf32, #tpu.memory_space<vmem>>, vector<1x128xf32>
    tpu.vector_store %arg5[%c2_142, %c0_143], %227 {strides = array<i32>} : memref<5x128xf32, #tpu.memory_space<vmem>>, vector<1x128xf32>,
    %c3_144 = arith.constant 3 : index
    %c0_145 = arith.constant 0 : index
    %278 = vector.load %arg5[%c3_144, %c0_145] : memref<5x128xf32, #tpu.memory_space<vmem>>, vector<1x128xf32>
    tpu.vector_store %arg5[%c3_144, %c0_145], %231 {strides = array<i32>} : memref<5x128xf32, #tpu.memory_space<vmem>>, vector<1x128xf32>,
    %c4_146 = arith.constant 4 : index
    %c0_147 = arith.constant 0 : index
    %279 = vector.load %arg5[%c4_146, %c0_147] : memref<5x128xf32, #tpu.memory_space<vmem>>, vector<1x128xf32>
    tpu.vector_store %arg5[%c4_146, %c0_147], %235 {strides = array<i32>} : memref<5x128xf32, #tpu.memory_space<vmem>>, vector<1x128xf32>,
    %280 = tpu.iota {dimensions = array<i32: 1>} : vector<1x128xi32>
    %c128_i32 = arith.constant 128 : i32
    %281 = arith.muli %arg0, %c128_i32 : i32
    %282 = vector.broadcast %281 : i32 to vector<1x128xi32>
    %283 = arith.addi %280, %282 : vector<1x128xi32>
    %c8_i32 = arith.constant 8 : i32
    %284 = vector.broadcast %c8_i32 : i32 to vector<1x128xi32>
    %285 = arith.cmpi slt, %283, %284 : vector<1x128xi32>
    %cst_148 = arith.constant 0.000000e+00 : f32
    %286 = vector.broadcast %cst_148 : f32 to vector<1x128xf32>
    %287 = arith.select %285, %274, %286 : vector<1x128xi1>, vector<1x128xf32>
    %cst_149 = arith.constant dense<0.000000e+00> : vector<1xf32>
    %288 = vector.multi_reduction <add>, %287, %cst_149 [1] : vector<1x128xf32> to vector<1xf32>
    %289 = vector.shape_cast %288 : vector<1xf32> to vector<1x1xf32>
    %c0_150 = arith.constant 0 : index
    %c0_151 = arith.constant 0 : index
    %290 = vector.load %arg7[%c0_150, %c0_151] : memref<1x1xf32, #tpu.memory_space<vmem>>, vector<1x1xf32>
    tpu.vector_store %arg7[%c0_150, %c0_151], %289 {strides = array<i32>} : memref<1x1xf32, #tpu.memory_space<vmem>>, vector<1x1xf32>,
    return
  }
  func.func @transform_0(%arg0: i32) -> (i32, i32) {
    %c0_i32 = arith.constant 0 : i32
    %c0_i32_0 = arith.constant 0 : i32
    return %c0_i32, %arg0 : i32, i32
  }
  func.func @transform_1(%arg0: i32) -> (i32, i32) {
    %c0_i32 = arith.constant 0 : i32
    %c0_i32_0 = arith.constant 0 : i32
    %c0_i32_1 = arith.constant 0 : i32
    return %c0_i32, %c0_i32_0 : i32, i32
  }
  func.func @transform_2(%arg0: i32) -> (i32, i32) {
    %c0_i32 = arith.constant 0 : i32
    %c0_i32_0 = arith.constant 0 : i32
    %c0_i32_1 = arith.constant 0 : i32
    return %c0_i32, %c0_i32_0 : i32, i32
  }
  func.func @transform_3(%arg0: i32) -> i32 {
    %c0_i32 = arith.constant 0 : i32
    %c0_i32_0 = arith.constant 0 : i32
    return %c0_i32 : i32
  }
  func.func @transform_4(%arg0: i32) -> (i32, i32) {
    %c0_i32 = arith.constant 0 : i32
    %c0_i32_0 = arith.constant 0 : i32
    return %c0_i32, %arg0 : i32, i32
  }
  func.func @transform_5(%arg0: i32) -> (i32, i32) {
    %c0_i32 = arith.constant 0 : i32
    %c0_i32_0 = arith.constant 0 : i32
    return %c0_i32, %arg0 : i32, i32
  }
  func.func @transform_6(%arg0: i32) -> (i32, i32) {
    %c0_i32 = arith.constant 0 : i32
    %c0_i32_0 = arith.constant 0 : i32
    return %arg0, %c0_i32 : i32, i32
  }
}

</mosaic_0001>

<bundles_post_ra>
// kernel: tpu_custom_call.1
= control target key start
LH: loop header
LB: loop body
LE: loop exit
PB: predicated region body
PF: predicated region fallthrough
CT: control target
= control target key end

     0   :  { %12 = vsyncpa [#allocation3], 0  ;;  %s779_s0 = inlined_call_operand.hbm [shape: f32[5,128], index: 0, kind: input, shape index: {}]   ;;  %s780_s1 = inlined_call_operand.hbm [shape: f32[3,5], index: 1, kind: input, shape index: {}]   ;;  %s781_s2 = inlined_call_operand.hbm [shape: f32[3,5], index: 2, kind: input, shape index: {}]   ;;  %s782_s3 = inlined_call_operand.vmem [shape: f32[3], index: 3, kind: input, shape index: {}]   ;;  %s783_s4 = inlined_call_operand.hbm [shape: f32[5,128], index: 4, kind: output, shape index: {0}]   ;;  %s784_s5 = inlined_call_operand.hbm [shape: f32[1,128], index: 5, kind: output, shape index: {1}]   ;;  %s785_s6 = inlined_call_operand.hbm [shape: f32[1,1], index: 6, kind: output, shape index: {2}]  }
   0x1   :  { %13 = vsyncpa [#allocation5], 0 }
   0x2   :  { %14 = vsyncpa [#allocation9], 0 }
   0x3   :  { %15 = vsyncpa [#allocation6], 0 }
   0x4   :  { %16 = vsyncpa [#allocation4], 0 }
   0x5   :  { %17 = vsyncpa [#allocation13], 0  ;;  %s23_s23 = sshll.u32 %s779_s0, 4  ;;  %s544_s24 = smov [#allocation2]   ;;  %s24_s23 = int_to_ptr.hbm [resolvable:$true] %s23_s23 }
   0x6   :  { %s25_s25 = sshll.u32 %s544_s24, 4  ;;  %s34_s28 = sshll.u32 %s780_s1, 4  ;;  %s26_s25 = int_to_ptr.vmem [resolvable:$true] %s25_s25  ;;  %s35_s28 = int_to_ptr.hbm [resolvable:$true] %s34_s28 }
   0x7   :  { %28 = dma.hbm_to_vmem [thread:$0]  %s24_s23, 128, %s26_s25, [#allocation3]  }
   0x8   :  { %s545_s29 = smov [#allocation7]   ;;  %s43_s8 = sshll.u32 %s781_s2, 4  ;;  %s44_s8 = int_to_ptr.hbm [resolvable:$true] %s43_s8 }
   0x9   :  { %37 = dma.hbm_to_smem %s35_s28, 64, %s545_s29, [#allocation5]  }
   0xa   :  { %s52_s0 = sshll.u32 %s782_s3, 4  ;;  %s546_s11 = smov [#allocation8]   ;;  %s53_s0 = int_to_ptr.vmem [resolvable:$true] %s52_s0 }
   0xb   :  { %46 = dma.hbm_to_smem %s44_s8, 64, %s546_s11, [#allocation9]  }
   0xc   :  { %s547_s12 = smov [#allocation10]  }
   0xd   :  { %55 = dma.vmem_to_smem %s53_s0, 16, %s547_s12, [#allocation6]  }
   0xe   :  { %532 = dma.done.wait [#allocation3], 128  }
   0xf   :  { %533 = vsyncadd [#allocation3], 4294967168 }
  0x10   :  { %534 = dma.done.wait [#allocation5], 64  }
  0x11   :  { %535 = vsyncadd [#allocation5], 4294967232 }
  0x12   :  { %536 = dma.done.wait [#allocation9], 64  }
  0x13   :  { %537 = vsyncadd [#allocation9], 4294967232 }
  0x14   :  { %538 = dma.done.wait [#allocation6], 16  }
  0x15   :  { %539 = vsyncadd [#allocation6], 4294967280 }
  0x16   :  { %72 = sfence }
  0x17   :  { %s598_s1 = sld [smem:[#allocation7]]  ;;  %v606_v0 = vld [vmem:[#allocation2] sm:$0x1]  ;;  %v610_v1 = vld [vmem:[#allocation2 + $0x1] sm:$0x1]  ;;  %vm294_vm1 = vcmask 1040384  }
  0x18   :  { %s600_s2 = sld [smem:[#allocation7 + $0x1]]  ;;  %v612_v2 = vld [vmem:[#allocation2 + $0x2] sm:$0x1]  ;;  %v615_v4 = vld [vmem:[#allocation2 + $0x3] sm:$0x1]  ;;  %vm298_vm2 = vcmask 0  }
  0x19   :  { %s602_s3 = sld [smem:[#allocation7 + $0x2]]  ;;  %v621_v9 = vld [vmem:[#allocation2 + $0x4] sm:$0x1] }
  0x1a   :  { %s604_s13 = sld [smem:[#allocation7 + $0x3]] }
  0x1b   :  { %s608_s14 = sld [smem:[#allocation7 + $0x4]] }
  0x1c   :  { %s109_s15 = sld [smem:[#allocation10]] }
  0x1d   :  { %v91_v3 = vstv %s598_s1  ;;  %s628_s16 = sld [smem:[#allocation8]] }
  0x1e   :  { %v92_v5 = vmul.f32 %v91_v3, %v606_v0  ;;  %v94_v6 = vstv %s600_s2  ;;  %s630_s17 = sld [smem:[#allocation8 + $0x1]] }
  0x1f   :  { %v95_v7 = vmul.f32 %v94_v6, %v610_v1  ;;  %v98_v8 = vstv %s602_s3  ;;  %s632_s18 = sld [smem:[#allocation8 + $0x2]] }
  0x20   :  { %v99_v10 = vmul.f32 %v98_v8, %v612_v2  ;;  %v102_v11 = vstv %s604_s13  ;;  %s634_s19 = sld [smem:[#allocation8 + $0x3]] }
  0x21   :  { %v96_v12 = vadd.f32 %v95_v7, %v92_v5  ;;  %v103_v13 = vmul.f32 %v102_v11, %v615_v4  ;;  %v106_v14 = vstv %s608_s14  ;;  %s636_s20 = sld [smem:[#allocation8 + $0x4]] }
  0x22   :  { %v107_v16 = vmul.f32 %v106_v14, %v621_v9  ;;  %v110_v18 = vstv %s109_s15  ;;  %s638_s21 = sld [smem:[#allocation7 + $0x80]]  ;;  %s548_s15 = smov [#allocation12]  }
  0x23   :  { %v100_v15 = vadd.f32 %v99_v10, %v96_v12  ;;  %s640_s22 = sld [smem:[#allocation7 + $0x81]]  ;;  %v116_v21 = vstv %s628_s16  ;;  %s316_s16 = sshll.u32 %s548_s15, 4  ;;  %s317_s16 = int_to_ptr.vmem [resolvable:$true] %s316_s16 }
  0x24   :  { %s642_s23 = sld [smem:[#allocation7 + $0x82]]  ;;  %v120_v22 = vstv %s630_s17 }
  0x25   :  { %v104_v17 = vadd.f32 %v103_v13, %v100_v15  ;;  %s644_s24 = sld [smem:[#allocation7 + $0x83]]  ;;  %v124_v23 = vstv %s632_s18 }
  0x26   :  { %s646_s25 = sld [smem:[#allocation7 + $0x84]]  ;;  %v128_v24 = vstv %s634_s19  ;;  %s318_s19 = sshll.u32 %s784_s5, 4  ;;  %s319_s19 = int_to_ptr.hbm [resolvable:$true] %s318_s19 }
  0x27   :  { %v108_v19 = vadd.f32 %v107_v16, %v104_v17  ;;  %v132_v25 = vstv %s636_s20  ;;  %s364_s26 = sld [smem:[#allocation10 + $0x1]]  ;;  %s549_s5 = smov [#allocation11]  }
  0x28   :  { %v155_v27 = vstv %s638_s21  ;;  %s673_s27 = sld [smem:[#allocation8 + $0x80]]  ;;  %s305_s20 = sshll.u32 %s549_s5, 4  ;;  %s306_s20 = int_to_ptr.vmem [resolvable:$true] %s305_s20 }
  0x29   :  { %v111_v20 = vadd.f32 %v110_v18, %v108_v19  ;;  %v158_v34 = vstv %s640_s22  ;;  %s675_s28 = sld [smem:[#allocation8 + $0x81]] }
  0x2a   :  { %v162_v35 = vstv %s642_s23  ;;  %s677_s29 = sld [smem:[#allocation8 + $0x82]]  ;;  %s307_s23 = sshll.u32 %s783_s4, 4  ;;  %s308_s23 = int_to_ptr.hbm [resolvable:$true] %s307_s23 }
  0x2b   :  { %388 = vtanh.f32 %v111_v20  ;;  %v166_v41 = vstv %s644_s24  ;;  %s679_s30 = sld [smem:[#allocation8 + $0x83]]  ;;  %s550_s24 = smov [#allocation14]  }
  0x2c   :  { %v170_v42 = vstv %s646_s25  ;;  %s683_s7 = sld [smem:[#allocation8 + $0x84]]  ;;  %s327_s25 = sshll.u32 %s550_s24, 4  ;;  %s328_s25 = int_to_ptr.vmem [resolvable:$true] %s327_s25 }
  0x2d   :  { %v174_v5 = vstv %s364_s26  ;;  %s685_s8 = sld [smem:[#allocation7 + $0x100]] }
  0x2e   :  { %s687_s9 = sld [smem:[#allocation7 + $0x101]]  ;;  %v180_v10 = vstv %s673_s27 }
  0x2f   :  { %s689_s10 = sld [smem:[#allocation7 + $0x102]] }
  0x30   :  { %s691_s0 = sld [smem:[#allocation7 + $0x103]]  ;;  %v188_v12 = vstv %s677_s29 }
  0x31   :  { %v389_v26 = vpop.eup %388  ;;  %v192_v13 = vstv %s679_s30  ;;  %s698_s11 = sld [smem:[#allocation7 + $0x104]] }
  0x32   :  { %v113_v28 = vmul.f32 %v389_v26, %v389_v26  ;;  %v117_v29 = vmul.f32 %v389_v26, %v116_v21  ;;  %v121_v30 = vmul.f32 %v389_v26, %v120_v22  ;;  %v125_v31 = vmul.f32 %v389_v26, %v124_v23  ;;  %s375_s12 = sld [smem:[#allocation10 + $0x2]] }
  0x33   :  { %v129_v32 = vmul.f32 %v389_v26, %v128_v24  ;;  %v133_v33 = vmul.f32 %v389_v26, %v132_v25  ;;  %v219_v16 = vstv %s685_s8  ;;  %s730_s1 = sld [smem:[#allocation8 + $0x100]] }
  0x34   :  { %v114_v36 = vsub.f32 1.0, %v113_v28  ;;  %v118_v37 = vadd.f32 %v117_v29, %v606_v0  ;;  %v122_v38 = vadd.f32 %v121_v30, %v610_v1  ;;  %v126_v39 = vadd.f32 %v125_v31, %v612_v2  ;;  %s732_s2 = sld [smem:[#allocation8 + $0x101]] }
  0x35   :  { %v130_v40 = vadd.f32 %v129_v32, %v615_v4  ;;  %v134_v47 = vadd.f32 %v133_v33, %v621_v9  ;;  %s734_s3 = sld [smem:[#allocation8 + $0x102]] }
  0x36   :  { %v135_v43 = vmul.f32 %v114_v36, %v91_v3  ;;  %v137_v44 = vmul.f32 %v114_v36, %v94_v6  ;;  %v140_v45 = vmul.f32 %v114_v36, %v98_v8  ;;  %v143_v46 = vmul.f32 %v114_v36, %v102_v11  ;;  %s736_s13 = sld [smem:[#allocation8 + $0x103]] }
  0x37   :  { %v156_v48 = vmul.f32 %v155_v27, %v118_v37  ;;  %v159_v49 = vmul.f32 %v158_v34, %v122_v38  ;;  %v163_v50 = vmul.f32 %v162_v35, %v126_v39  ;;  %v146_v54 = vmul.f32 %v114_v36, %v106_v14  ;;  %s740_s14 = sld [smem:[#allocation8 + $0x104]] }
  0x38   :  { %v136_v51 = vmul.f32 %v135_v43, %v116_v21  ;;  %v138_v52 = vmul.f32 %v137_v44, %v120_v22  ;;  %v141_v53 = vmul.f32 %v140_v45, %v124_v23  ;;  %v167_v56 = vmul.f32 %v166_v41, %v130_v40 }
  0x39   :  { %v160_v55 = vadd.f32 %v159_v49, %v156_v48  ;;  %v144_v58 = vmul.f32 %v143_v46, %v128_v24  ;;  %v171_v60 = vmul.f32 %v170_v42, %v134_v47  ;;  %v147_v62 = vmul.f32 %v146_v54, %v132_v25 }
  0x3a   :  { %v139_v57 = vadd.f32 %v138_v52, %v136_v51  ;;  %v184_v11 = vstv %s675_s28  ;;  %v196_v14 = vstv %s683_s7  ;;  %v222_v23 = vstv %s687_s9  ;;  %s329_s28 = sshll.u32 %s785_s6, 4  ;;  %s330_s28 = int_to_ptr.hbm [resolvable:$true] %s329_s28 }
  0x3b   :  { %v164_v59 = vadd.f32 %v163_v50, %v160_v55  ;;  %v226_v24 = vstv %s689_s10  ;;  %v230_v33 = vstv %s691_s0  ;;  %v238_v52 = vstv %s375_s12 }
  0x3c   :  { %v142_v61 = vadd.f32 %v141_v53, %v139_v57 }
  0x3d   :  { %v168_v63 = vadd.f32 %v167_v56, %v164_v59 }
  0x3e   :  { %v145_v3 = vadd.f32 %v144_v58, %v142_v61 }
  0x3f   :  { %v172_v6 = vadd.f32 %v171_v60, %v168_v63  ;;  %v244_v63 = vstv %s730_s1 }
  0x40   :  { %v681_v7 = vadd.f32 %v147_v62, %v145_v3  ;;  %v248_v3 = vstv %s732_s2 }
  0x41   :  { %v175_v8 = vadd.f32 %v174_v5, %v172_v6  ;;  %v252_v5 = vstv %s734_s3 }
  0x42   :  { %v149_v60 = vadd.f32 1.0, %v681_v7 }
  0x43   :  { %390 = vtanh.f32 %v175_v8 }
  0x49   :  { %v391_v15 = vpop.eup %390 }
  0x4a   :  { %v177_v17 = vmul.f32 %v391_v15, %v391_v15  ;;  %v181_v18 = vmul.f32 %v391_v15, %v180_v10  ;;  %v185_v19 = vmul.f32 %v391_v15, %v184_v11  ;;  %v189_v20 = vmul.f32 %v391_v15, %v188_v12 }
  0x4b   :  { %v193_v21 = vmul.f32 %v391_v15, %v192_v13  ;;  %v197_v22 = vmul.f32 %v391_v15, %v196_v14 }
  0x4c   :  { %v178_v25 = vsub.f32 1.0, %v177_v17  ;;  %v703_v26 = vadd.f32 %v181_v18, %v118_v37  ;;  %v705_v28 = vadd.f32 %v185_v19, %v122_v38  ;;  %v707_v29 = vadd.f32 %v189_v20, %v126_v39 }
  0x4d   :  { %v709_v30 = vadd.f32 %v193_v21, %v130_v40  ;;  %v716_v36 = vadd.f32 %v197_v22, %v134_v47  ;;  %v234_v40 = vstv %s698_s11  ;;  %v150_v18 = vand.u32 2147483647, %v149_v60 }
  0x4e   :  { %v199_v31 = vmul.f32 %v178_v25, %v155_v27  ;;  %v201_v32 = vmul.f32 %v178_v25, %v158_v34  ;;  %v220_v43 = vmul.f32 %v219_v16, %v703_v26  ;;  %v223_v37 = vmul.f32 %v222_v23, %v705_v28 }
  0x4f   :  { %v227_v38 = vmul.f32 %v226_v24, %v707_v29  ;;  %v204_v39 = vmul.f32 %v178_v25, %v162_v35  ;;  %v231_v34 = vmul.f32 %v230_v33, %v709_v30  ;;  %v235_v48 = vmul.f32 %v234_v40, %v716_v36 }
  0x50   :  { %v200_v44 = vmul.f32 %v199_v31, %v180_v10  ;;  %v202_v45 = vmul.f32 %v201_v32, %v184_v11  ;;  %v224_v27 = vadd.f32 %v223_v37, %v220_v43  ;;  %v207_v50 = vmul.f32 %v178_v25, %v166_v41 }
  0x51   :  { %v205_v49 = vmul.f32 %v204_v39, %v188_v12  ;;  %v210_v35 = vmul.f32 %v178_v25, %v170_v42  ;;  %v256_v12 = vstv %s736_s13  ;;  %v260_v19 = vstv %s740_s14 }
  0x52   :  { %v228_v46 = vadd.f32 %v227_v38, %v224_v27  ;;  %v203_v47 = vadd.f32 %v202_v45, %v200_v44  ;;  %v208_v55 = vmul.f32 %v207_v50, %v192_v13  ;;  %v287_v43 = vlaneseq }
  0x53   :  { %v211_v58 = vmul.f32 %v210_v35, %v196_v14  ;;  %v81_v50 = vmul.f32 %v612_v2, %v612_v2 }
  0x54   :  { %v232_v51 = vadd.f32 %v231_v34, %v228_v46  ;;  %v206_v54 = vadd.f32 %v205_v49, %v203_v47  ;;  %v288_v39 = vand.u32 127, %v287_v43  ;;  %v79_v47 = vmul.f32 %v610_v1, %v610_v1 }
  0x56   :  { %v236_v53 = vadd.f32 %v235_v48, %v232_v51  ;;  %v209_v57 = vadd.f32 %v208_v55, %v206_v54  ;;  %vm292_vm0 = vcmp.lt.s32.totalorder %v288_v39, 8  ;;  %v78_v48 = vmul.f32 %v606_v0, %v606_v0 }
  0x57   :  { %v85_v54 = vmul.f32 %v621_v9, %v621_v9 }
  0x58   :  { %v239_v56 = vadd.f32 %v238_v52, %v236_v53  ;;  %v212_v59 = vadd.f32 %v211_v58, %v209_v57  ;;  %v80_v49 = vadd.f32 %v79_v47, %v78_v48  ;;  %v83_v52 = vmul.f32 %v615_v4, %v615_v4 }
  0x5a   :  { %392 = vtanh.f32 %v239_v56  ;;  %v213_v62 = vadd.f32 1.0, %v212_v59  ;;  %v82_v51 = vadd.f32 %v81_v50, %v80_v49 }
  0x5b   :  { %394 = vlog2.f32 %v150_v18 }
  0x5c   :  { %v214_v20 = vand.u32 2147483647, %v213_v62  ;;  %v84_v53 = vadd.f32 %v83_v52, %v82_v51 }
  0x5e   :  { %396 = vlog2.f32 %v214_v20  ;;  %v86_v55 = vadd.f32 %v85_v54, %v84_v53 }
  0x60   :  { %v738_v41 = vpop.eup %392  ;;  %v87_v1 = vmul.f32 0.5, %v86_v55 }
  0x61   :  { %v241_v42 = vmul.f32 %v738_v41, %v738_v41  ;;  %v257_v0 = vmul.f32 %v738_v41, %v256_v12  ;;  %v261_v2 = vmul.f32 %v738_v41, %v260_v19  ;;  %v245_v35 = vmul.f32 %v738_v41, %v244_v63 }
  0x62   :  { %v249_v4 = vmul.f32 %v738_v41, %v248_v3  ;;  %v253_v56 = vmul.f32 %v738_v41, %v252_v5  ;;  %v88_v57 = vsub.f32 -4.5946927, %v87_v1 }
  0x63   :  { %v242_v61 = vsub.f32 1.0, %v241_v42  ;;  %v246_v9 = vadd.f32 %v245_v35, %v703_v26  ;;  %v258_v42 = vadd.f32 %v257_v0, %v709_v30  ;;  %v262_v41 = vadd.f32 %v261_v2, %v716_v36 }
  0x64   :  { %v250_v58 = vadd.f32 %v249_v4, %v705_v28  ;;  %v254_v59 = vadd.f32 %v253_v56, %v707_v29  ;;  %89 = vst [vmem:[#allocation12] sm:$0x1] %v88_v57 }
  0x65   :  { %v263_v6 = vmul.f32 %v242_v61, %v219_v16  ;;  %v265_v8 = vmul.f32 %v242_v61, %v222_v23  ;;  %v268_v10 = vmul.f32 %v242_v61, %v226_v24  ;;  %v271_v11 = vmul.f32 %v242_v61, %v230_v33  ;;  %v395_v23 = vpop.eup %394  ;;  %321 = dma.vmem_to_hbm [thread:$0]  %s317_s16, 16, %s319_s19, [#allocation13]   ;;  %282 = vst [vmem:[#allocation11] sm:$0x1] %v246_v9 }
  0x66   :  { %v274_v17 = vmul.f32 %v242_v61, %v234_v40  ;;  %v397_v24 = vpop.eup %396  ;;  %v152_v37 = vmul.f32 0.6931472, %v395_v23  ;;  %283 = vst [vmem:[#allocation11 + $0x1] sm:$0x1] %v250_v58 }
  0x67   :  { %v264_v13 = vmul.f32 %v263_v6, %v244_v63  ;;  %v266_v14 = vmul.f32 %v265_v8, %v248_v3  ;;  %v269_v15 = vmul.f32 %v268_v10, %v252_v5  ;;  %v272_v7 = vmul.f32 %v271_v11, %v256_v12  ;;  %284 = vst [vmem:[#allocation11 + $0x2] sm:$0x1] %v254_v59 }
  0x68   :  { %v275_v25 = vmul.f32 %v274_v17, %v260_v19  ;;  %v216_v38 = vmul.f32 0.6931472, %v397_v24  ;;  %285 = vst [vmem:[#allocation11 + $0x3] sm:$0x1] %v258_v42 }
  0x69   :  { %v267_v21 = vadd.f32 %v266_v14, %v264_v13  ;;  %286 = vst [vmem:[#allocation11 + $0x4] sm:$0x1] %v262_v41 }
  0x6a   :  { %v217_v40 = vadd.f32 %v216_v38, %v152_v37  ;;  %310 = dma.vmem_to_hbm [thread:$0]  %s306_s20, 128, %s308_s23, [#allocation4]  }
  0x6b   :  { %v270_v22 = vadd.f32 %v269_v15, %v267_v21 }
  0x6d   :  { %v273_v31 = vadd.f32 %v272_v7, %v270_v22 }
  0x6f   :  { %v276_v32 = vadd.f32 %v275_v25, %v273_v31 }
  0x71   :  { %v277_v16 = vadd.f32 1.0, %v276_v32 }
  0x73   :  { %v278_v33 = vand.u32 2147483647, %v277_v16 }
  0x75   :  { %398 = vlog2.f32 %v278_v33 }
  0x7b   :  { %v399_v44 = vpop.eup %398 }
  0x7c   :  { %v280_v45 = vmul.f32 0.6931472, %v399_v44 }
  0x7e   :  { %v281_v27 = vadd.f32 %v280_v45, %v217_v40 }
  0x80   :  { %v293_v34 = vsel %vm292_vm0, %v281_v27, 0.0 }
  0x81   :  { %v295_v46 = vsel %vm294_vm1, %v293_v34, 0.0 }
  0x82   :  { %296 = vadd.xlane.f32.xlu0 %v295_v46 }
  0xf5   :  { %v297_v26 = vpop.xlane.xlu0 %296 }
  0xf6   :  { %299 = vst.msk [vmem:[#allocation14] sm:$0x1] %vm298_vm2, %v297_v26 }
  0xf7   :  { %332 = dma.vmem_to_hbm [thread:$0]  %s328_s25, 16, %s330_s28, [#allocation13]  }
  0xf8   :  { %540 = dma.done.wait [#allocation4], 128  }
  0xf9   :  { %541 = vsyncadd [#allocation4], 4294967168 }
  0xfa   :  { %542 = dma.done.wait [#allocation13], 32  }
  0xfb   :  { %543 = vsyncadd [#allocation13], 4294967264 }
  0xfc   :  { %345 = vsyncpa [#allocation3], 1 }
  0xfd   :  { %346 = vsyncpa [#allocation4], 1 }
  0xfe   :  { %347 = vsyncpa [#allocation13], 1 }
  0xff   :  { %348 = vsyncpa [#allocation5], 1 }
 0x100   :  { %349 = vsyncpa [#allocation9], 1 }
 0x101   :  { %350 = vsyncpa [#allocation6], 1 }

</bundles_post_ra>
